<compile_context>
chip_gen: v7x
topology: tpu7x:2x2x1
jax: 0.10.0
libtpu: 0.0.40
codegen_flags: <defaults>
</compile_context>

<pallas_src>
import jax
import jax.numpy as jnp
from jax.experimental import pallas as pl
from jax.experimental.pallas import tpu as pltpu


def _round_up(x, m):
    return ((x + m - 1) // m) * m


def _pad_to(x, shape):
    pads = [(0, t - s) for s, t in zip(x.shape, shape)]
    if any(p[1] for p in pads):
        return jnp.pad(x, pads)
    return x


def _sublane_multiple(dtype):
    # f32 -> 8, bf16 -> 16, int8/fp8 -> 32 (sub-32-bit dtypes pack sublanes)
    return {4: 8, 2: 16, 1: 32}.get(jnp.dtype(dtype).itemsize, 8)


# ---------------------------------------------------------------------------
# Path A: whole x2 resident in VMEM (one DMA per batch), grid = (B, M-tiles).
# ---------------------------------------------------------------------------
def _resident_kernel(x1_ref, x2_ref, out_t_ref, out_n_ref, out_t2_ref):
    x1 = x1_ref[0]       # (TM, Kp)
    x2 = x2_ref[0]       # (Kp, Kp) -- resident, reused for both products

    # x1 @ x2^T without materializing a transpose: contract on x2's dim 1.
    t = jax.lax.dot_general(
        x1, x2, dimension_numbers=(((1,), (1,)), ((), ())),
        preferred_element_type=jnp.float32,
    ).astype(out_t_ref.dtype)

    # x1 @ x2: contract on x2's dim 0.
    n = jax.lax.dot_general(
        x1, x2, dimension_numbers=(((1,), (0,)), ((), ())),
        preferred_element_type=jnp.float32,
    ).astype(out_n_ref.dtype)

    out_t_ref[0] = t
    out_n_ref[0] = n
    out_t2_ref[0] = t    # res[2] fused in-kernel (== res[0])


# ---------------------------------------------------------------------------
# Path B: tiled with an innermost K-reduction axis and f32 accumulators.
# grid = (B, N-tiles, M-tiles, K-tiles)
# ---------------------------------------------------------------------------
def _tiled_kernel(x1_ref, x2r_ref, x2c_ref, out_t_ref, out_n_ref, out_t2_ref,
                  acc_t_ref, acc_n_ref):
    k = pl.program_id(3)

    @pl.when(k == 0)
    def _():
        acc_t_ref[...] = jnp.zeros_like(acc_t_ref)
        acc_n_ref[...] = jnp.zeros_like(acc_n_ref)

    x1 = x1_ref[0]       # (TM, TK)
    x2r = x2r_ref[0]     # (TN, TK) row-slab of x2   -> x1 @ x2^T
    x2c = x2c_ref[0]     # (TK, TN) column-slab of x2 -> x1 @ x2

    acc_t_ref[...] += jax.lax.dot_general(
        x1, x2r, dimension_numbers=(((1,), (1,)), ((), ())),
        preferred_element_type=jnp.float32)
    acc_n_ref[...] += jax.lax.dot_general(
        x1, x2c, dimension_numbers=(((1,), (0,)), ((), ())),
        preferred_element_type=jnp.float32)

    @pl.when(k == pl.num_programs(3) - 1)
    def _():
        t = acc_t_ref[...].astype(out_t_ref.dtype)
        out_t_ref[0] = t
        out_t2_ref[0] = t
        out_n_ref[0] = acc_n_ref[...].astype(out_n_ref.dtype)


def model_forward(x1, x2, *, cast_to_bf16=False, force_pallas=False,
                  force_tiled=False):
    """Returns [x1 @ x2^T, x1 @ x2, x1 @ x2^T], matching the torch Model."""
    B, M, K = x1.shape
    B2, K2, K3 = x2.shape
    assert B == B2 and K == K2 == K3, "x2 must be (B, K, K) matching x1's K"

    out_dtype = x1.dtype

    # Tiny-shape fallback: padding K up to the 128-lane width plus per-step
    # grid overhead dominates -- XLA's fused batched matmul wins outright.
    if not force_pallas and max(M, K) < 128:
        t = jnp.matmul(x1, jnp.swapaxes(x2, 1, 2))
        n = jnp.matmul(x1, x2)
        return [t, n, t]

    compute_dtype = jnp.bfloat16 if cast_to_bf16 else x1.dtype
    if cast_to_bf16:
        x1 = x1.astype(jnp.bfloat16)
        x2 = x2.astype(jnp.bfloat16)
    in_item = jnp.dtype(compute_dtype).itemsize
    out_item = jnp.dtype(out_dtype).itemsize
    sub = _sublane_multiple(compute_dtype)

    # M tile: sublane-aligned, capped at 256 (v7x-safe; v5e/v6e could go 512).
    TM = 256 if M >= 256 else _round_up(M, sub)
    Mp = _round_up(M, TM)
    # Contraction / output-col padding to the lane width only (not to TN).
    Kp = _round_up(K, 128)

    # Per-step VMEM footprint of the resident path (inputs & outputs double
    # buffered).  Keep under a v7x-safe cap (64 MiB physical VMEM).
    resident_budget = (2 * in_item * (TM * Kp + Kp * Kp)
                       + 2 * out_item * 3 * TM * Kp)
    RESIDENT_CAP = 40 * 1024 * 1024
    use_resident = (not force_tiled) and resident_budget <= RESIDENT_CAP

    if use_resident:
        x1p = _pad_to(x1, (B, Mp, Kp))
        x2p = _pad_to(x2, (B, Kp, Kp))
        grid = (B, Mp // TM)

        flops = 2 * 2 * B * Mp * Kp * Kp
        bytes_accessed = (in_item * (B * Mp * Kp        # x1 read once
                                     + B * Kp * Kp)     # x2 read once per batch
                          + out_item * 3 * B * Mp * Kp)  # three outputs written

        out_t, out_n, out_t2 = pl.pallas_call(
            _resident_kernel,
            out_shape=tuple(jax.ShapeDtypeStruct((B, Mp, Kp), out_dtype)
                            for _ in range(3)),
            grid_spec=pltpu.PrefetchScalarGridSpec(
                num_scalar_prefetch=0,
                grid=grid,
                in_specs=[
                    # x1 tile per (b, m)
                    pl.BlockSpec((1, TM, Kp), lambda b, m: (b, m, 0)),
                    # whole x2 resident: fetched once per batch (index ignores m)
                    pl.BlockSpec((1, Kp, Kp), lambda b, m: (b, 0, 0)),
                ],
                out_specs=[pl.BlockSpec((1, TM, Kp), lambda b, m: (b, m, 0))
                           for _ in range(3)],
            ),
            compiler_params=pltpu.CompilerParams(
                dimension_semantics=("parallel", "parallel"),
                vmem_limit_bytes=48 * 1024 * 1024,
            ),
            cost_estimate=pl.CostEstimate(
                flops=flops, transcendentals=0, bytes_accessed=bytes_accessed),
        )(x1p, x2p)

    else:
        # Tiled path with K-reduction.  A single padded extent serves both the
        # output-column (TN) and contraction (TK) tilings of the square x2.
        TN, TK = 256, 512
        Kp = _round_up(K, max(TN, TK))
        x1p = _pad_to(x1, (B, Mp, Kp))
        x2p = _pad_to(x2, (B, Kp, Kp))
        grid = (B, Kp // TN, Mp // TM, Kp // TK)

        flops = 2 * 2 * B * Mp * Kp * Kp
        bytes_accessed = (in_item * (B * (Kp // TN) * Mp * Kp       # x1 re-read per n
                                     + 2 * B * (Mp // TM) * Kp * Kp)  # two x2 slabs per m
                          + out_item * 3 * B * Mp * Kp)

        out_t, out_n, out_t2 = pl.pallas_call(
            _tiled_kernel,
            out_shape=tuple(jax.ShapeDtypeStruct((B, Mp, Kp), out_dtype)
                            for _ in range(3)),
            grid_spec=pltpu.PrefetchScalarGridSpec(
                num_scalar_prefetch=0,
                grid=grid,
                in_specs=[
                    pl.BlockSpec((1, TM, TK), lambda b, n, m, k: (b, m, k)),
                    pl.BlockSpec((1, TN, TK), lambda b, n, m, k: (b, n, k)),
                    pl.BlockSpec((1, TK, TN), lambda b, n, m, k: (b, k, n)),
                ],
                out_specs=[pl.BlockSpec((1, TM, TN),
                                        lambda b, n, m, k: (b, m, n))
                           for _ in range(3)],
                scratch_shapes=[pltpu.VMEM((TM, TN), jnp.float32),
                                pltpu.VMEM((TM, TN), jnp.float32)],
            ),
            compiler_params=pltpu.CompilerParams(
                dimension_semantics=("parallel", "parallel", "parallel",
                                     "arbitrary"),
                vmem_limit_bytes=32 * 1024 * 1024,
            ),
            cost_estimate=pl.CostEstimate(
                flops=flops, transcendentals=0, bytes_accessed=bytes_accessed),
        )(x1p, x2p, x2p)

    out_t = out_t[:, :M, :K]
    out_n = out_n[:, :M, :K]
    out_t2 = out_t2[:, :M, :K]
    return [out_t, out_n, out_t2]


def _assert_close(got, want, name):
    scale = float(jnp.maximum(jnp.max(jnp.abs(want)), 1.0))
    err = float(jnp.max(jnp.abs(got - want))) / scale
    assert err < 2e-2, f"{name}: relative error {err}"


def _check(x1, x2, res, name):
    hi = jax.lax.Precision.HIGHEST
    ref_t = jnp.einsum("bmk,bnk->bmn", x1, x2, precision=hi)
    ref_n = jnp.einsum("bmk,bkn->bmn", x1, x2, precision=hi)
    assert res[0].shape == ref_t.shape and res[1].shape == ref_n.shape
    _assert_close(res[0], ref_t, name + "[0]")
    _assert_close(res[1], ref_n, name + "[1]")
    _assert_close(res[2], ref_t, name + "[2]")


if __name__ == "__main__":
    key = jax.random.PRNGKey(0)

    # 1) resident-x2 Pallas path (no padding needed)
    k1, k2, key = jax.random.split(key, 3)
    B, M, K = 2, 16, 128
    x1 = jax.random.normal(k1, (B, M, K), dtype=jnp.float32)
    x2 = jax.random.normal(k2, (B, K, K), dtype=jnp.float32)
    res = model_forward(x1, x2)
    res = [jax.block_until_ready(r) for r in res]
    _check(x1, x2, res, "resident")

    # 2) resident path with lane/sublane padding (K not a multiple of 128)
    k1, k2, key = jax.random.split(key, 3)
    B, M, K = 2, 8, 48
    x1 = jax.random.normal(k1, (B, M, K), dtype=jnp.float32)
    x2 = jax.random.normal(k2, (B, K, K), dtype=jnp.float32)
    res = model_forward(x1, x2, force_pallas=True)
    res = [jax.block_until_ready(r) for r in res]
    _check(x1, x2, res, "resident+pad")

    # 3) tiled path with the K-reduction grid axis (forced at a small shape)
    k1, k2, key = jax.random.split(key, 3)
    B, M, K = 2, 64, 1024
    x1 = jax.random.normal(k1, (B, M, K), dtype=jnp.float32)
    x2 = jax.random.normal(k2, (B, K, K), dtype=jnp.float32)
    res = model_forward(x1, x2, force_pallas=True, force_tiled=True)
    res = [jax.block_until_ready(r) for r in res]
    _check(x1, x2, res, "tiled")

    # 4) tiny-shape auto fallback (the original module's 1x2x2 inputs)
    k1, k2, key = jax.random.split(key, 3)
    x1 = jax.random.normal(k1, (1, 2, 2), dtype=jnp.float32)
    x2 = jax.random.normal(k2, (1, 2, 2), dtype=jnp.float32)
    res = model_forward(x1, x2)
    res = [jax.block_until_ready(r) for r in res]
    _check(x1, x2, res, "fallback")

    print("KERNEL_OK")
</pallas_src>

<mosaic_0001>
module attributes {stable_mosaic.version = 11 : i64} {
  func.func @_resident_kernel(%arg0: i32, %arg1: i32, %arg2: memref<1x16x128xf32, #tpu.memory_space<vmem>>, %arg3: memref<1x128x128xf32, #tpu.memory_space<vmem>>, %arg4: memref<1x16x128xf32, #tpu.memory_space<vmem>>, %arg5: memref<1x16x128xf32, #tpu.memory_space<vmem>>, %arg6: memref<1x16x128xf32, #tpu.memory_space<vmem>>) attributes {dimension_semantics = [#tpu.dimension_semantics<parallel>, #tpu.dimension_semantics<parallel>], iteration_bounds = array<i64: 2, 1>, scalar_prefetch = 0 : i64, scratch_operands = 0 : i64, tpu.core_type = #tpu.core_type<tc>, window_params = [{transform_indices = @transform_0, window_bounds = array<i64: 1, 16, 128>}, {transform_indices = @transform_1, window_bounds = array<i64: 1, 128, 128>}, {transform_indices = @transform_2, window_bounds = array<i64: 1, 16, 128>}, {transform_indices = @transform_3, window_bounds = array<i64: 1, 16, 128>}, {transform_indices = @transform_4, window_bounds = array<i64: 1, 16, 128>}]} {
    %c0 = arith.constant 0 : index
    %c0_0 = arith.constant 0 : index
    %c0_1 = arith.constant 0 : index
    %0 = vector.load %arg2[%c0, %c0_0, %c0_1] : memref<1x16x128xf32, #tpu.memory_space<vmem>>, vector<1x16x128xf32>
    %1 = vector.shape_cast %0 : vector<1x16x128xf32> to vector<16x128xf32>
    %c0_2 = arith.constant 0 : index
    %c0_3 = arith.constant 0 : index
    %c0_4 = arith.constant 0 : index
    %2 = vector.load %arg3[%c0_2, %c0_3, %c0_4] : memref<1x128x128xf32, #tpu.memory_space<vmem>>, vector<1x128x128xf32>
    %3 = vector.shape_cast %2 : vector<1x128x128xf32> to vector<128x128xf32>
    %cst = arith.constant dense<0.000000e+00> : vector<16x128xf32>
    %4 = tpu.matmul %1, %3, %cst {dimension_numbers = #tpu.dot_dimension_numbers<[1], [1], [0], [0], [0, 0, 1, 0], [], []>} : vector<16x128xf32>, vector<128x128xf32>, vector<16x128xf32> -> vector<16x128xf32>
    %cst_5 = arith.constant dense<0.000000e+00> : vector<16x128xf32>
    %5 = tpu.matmul %1, %3, %cst_5 {dimension_numbers = #tpu.dot_dimension_numbers<[1], [0], [0], [1], [0, 0, 1, 1], [], []>} : vector<16x128xf32>, vector<128x128xf32>, vector<16x128xf32> -> vector<16x128xf32>
    %c0_6 = arith.constant 0 : index
    %c0_7 = arith.constant 0 : index
    %c0_8 = arith.constant 0 : index
    %6 = vector.load %arg4[%c0_6, %c0_7, %c0_8] : memref<1x16x128xf32, #tpu.memory_space<vmem>>, vector<1x16x128xf32>
    %7 = vector.shape_cast %6 : vector<1x16x128xf32> to vector<16x128xf32>
    %8 = vector.shape_cast %4 : vector<16x128xf32> to vector<1x16x128xf32>
    tpu.vector_store %arg4[%c0_6, %c0_7, %c0_8], %8 {strides = array<i32>} : memref<1x16x128xf32, #tpu.memory_space<vmem>>, vector<1x16x128xf32>,
    %c0_9 = arith.constant 0 : index
    %c0_10 = arith.constant 0 : index
    %c0_11 = arith.constant 0 : index
    %9 = vector.load %arg5[%c0_9, %c0_10, %c0_11] : memref<1x16x128xf32, #tpu.memory_space<vmem>>, vector<1x16x128xf32>
    %10 = vector.shape_cast %9 : vector<1x16x128xf32> to vector<16x128xf32>
    %11 = vector.shape_cast %5 : vector<16x128xf32> to vector<1x16x128xf32>
    tpu.vector_store %arg5[%c0_9, %c0_10, %c0_11], %11 {strides = array<i32>} : memref<1x16x128xf32, #tpu.memory_space<vmem>>, vector<1x16x128xf32>,
    %c0_12 = arith.constant 0 : index
    %c0_13 = arith.constant 0 : index
    %c0_14 = arith.constant 0 : index
    %12 = vector.load %arg6[%c0_12, %c0_13, %c0_14] : memref<1x16x128xf32, #tpu.memory_space<vmem>>, vector<1x16x128xf32>
    %13 = vector.shape_cast %12 : vector<1x16x128xf32> to vector<16x128xf32>
    %14 = vector.shape_cast %4 : vector<16x128xf32> to vector<1x16x128xf32>
    tpu.vector_store %arg6[%c0_12, %c0_13, %c0_14], %14 {strides = array<i32>} : memref<1x16x128xf32, #tpu.memory_space<vmem>>, vector<1x16x128xf32>,
    return
  }
  func.func @transform_0(%arg0: i32, %arg1: i32) -> (i32, i32, i32) {
    %c0_i32 = arith.constant 0 : i32
    %c0_i32_0 = arith.constant 0 : i32
    return %arg0, %arg1, %c0_i32 : i32, i32, i32
  }
  func.func @transform_1(%arg0: i32, %arg1: i32) -> (i32, i32, i32) {
    %c0_i32 = arith.constant 0 : i32
    %c0_i32_0 = arith.constant 0 : i32
    %c0_i32_1 = arith.constant 0 : i32
    return %arg0, %c0_i32, %c0_i32_0 : i32, i32, i32
  }
  func.func @transform_2(%arg0: i32, %arg1: i32) -> (i32, i32, i32) {
    %c0_i32 = arith.constant 0 : i32
    %c0_i32_0 = arith.constant 0 : i32
    return %arg0, %arg1, %c0_i32 : i32, i32, i32
  }
  func.func @transform_3(%arg0: i32, %arg1: i32) -> (i32, i32, i32) {
    %c0_i32 = arith.constant 0 : i32
    %c0_i32_0 = arith.constant 0 : i32
    return %arg0, %arg1, %c0_i32 : i32, i32, i32
  }
  func.func @transform_4(%arg0: i32, %arg1: i32) -> (i32, i32, i32) {
    %c0_i32 = arith.constant 0 : i32
    %c0_i32_0 = arith.constant 0 : i32
    return %arg0, %arg1, %c0_i32 : i32, i32, i32
  }
}

</mosaic_0001>

<bundles_post_ra>
// kernel: tpu_custom_call.1
= control target key start
LH: loop header
LB: loop body
LE: loop exit
PB: predicated region body
PF: predicated region fallthrough
CT: control target
= control target key end

     0   :  { %s1580_s0 = inlined_call_operand.hbm [shape: f32[2,16,128], index: 0, kind: input, shape index: {}]   ;;  %s1581_s1 = inlined_call_operand.hbm [shape: f32[2,128,128], index: 1, kind: input, shape index: {}]   ;;  %s1582_s2 = inlined_call_operand.hbm [shape: f32[2,16,128], index: 2, kind: output, shape index: {0}]   ;;  %s1583_s3 = inlined_call_operand.hbm [shape: f32[2,16,128], index: 3, kind: output, shape index: {1}]   ;;  %s1584_s4 = inlined_call_operand.hbm [shape: f32[2,16,128], index: 4, kind: output, shape index: {2}]  }
   0x1   :  { %1589 = sst [smem:[#allocation15_spill]] %s1580_s0 }
   0x2   :  { %10 = vsyncpa [#allocation3], 0 }
   0x3   :  { %12 = vsyncpa [#allocation3 + $0x1], 0 }
   0x4   :  { %13 = vsyncpa [#allocation6], 0 }
   0x5   :  { %15 = vsyncpa [#allocation6 + $0x1], 0 }
   0x6   :  { %16 = vsyncpa [#allocation4], 0 }
   0x7   :  { %18 = vsyncpa [#allocation4 + $0x1], 0 }
   0x8   :  { %19 = vsyncpa [#allocation9], 0 }
   0x9   :  { %21 = vsyncpa [#allocation9 + $0x1], 0  ;;  %s1238_s15 = smov 0   ;;  %s1240_s16 = smov 0  }
   0xa   :  { %s1242_s17 = smov 0   ;;  %s1244_s18 = smov 0  }
   0xb   :  { %s1246_s19 = smov 0   ;;  %s1248_s20 = smov 0  }
   0xc LB: > { %s1269_s21 = sadd.s32 4294967295, %s1202_s20   ;;  %s1586_s22 = sadd.s32 4294967294, %s1202_s20   ;;  %s1202_s20 = sphi %s1248_s20, %s27_s20   ;;  %s1198_s19 = sphi %s1246_s19, %s1608_s19   ;;  %s1194_s18 = sphi %s1244_s18, %s1607_s18   ;;  %s1190_s17 = sphi %s1242_s17, %s1606_s17   ;;  %s1186_s16 = sphi %s1240_s16, %s1605_s16   ;;  %s1182_s15 = sphi %s1238_s15, %s1604_s15  }
   0xd   : > { %s39_s23 = sadd.s32 1, %s1198_s19  ;;  %s48_s24 = sadd.s32 1, %s1190_s17 }
   0xe   : > { %p41_p0 = scmp.ge.s32.totalorder %s39_s23, 2  ;;  %p55_p1 = scmp.ne.s32.totalorder %s1190_s17, %s1186_s16 }
   0xf   : > { %p56_p2 = scmp.eq.s32.totalorder %s1202_s20, 0  ;;  %p61_p3 = scmp.ne.s32.totalorder %s1186_s16, %s1182_s15 }
  0x10   : > { %s1610_s23 = smov (%p41_p0, %s39_s23), 0  ;;  %p62_p5 = scmp.eq.s32.totalorder %s1269_s21, 0 }
  0x11   : > { %p1281_p4 = por %p56_p2, %p55_p1  ;;  %s43_s26 = ssub.s32 %s1198_s19, %s1610_s23 }
  0x12   : > { %p113_p6 = scmp.eq.s32.totalorder %s1269_s21, 1  ;;  %p46_p7 = scmp.eq.s32.totalorder %s43_s26, 0 }
  0x13   : > { %p1289_p8 = por %p62_p5, %p61_p3  ;;  %p119_p10 = scmp.eq.s32.totalorder %s1586_s22, 1 }
  0x14   : > { %p1293_p9 = por %p113_p6, %p55_p1  ;;  %p942_p13 = scmp.lt.s32.totalorder %s1202_s20, 2 }
  0x15   : > { %s1591_s27 = scalar_select %p1289_p8, 1, 0 }
  0x16   : > { %s1592_s28 = scalar_select %p1293_p9, 1, 0 }
  0x17   : > { %s1300_s29 = scalar_select %p46_p7, %s1190_s17, %s48_s24  }
  0x18   : > { %p1302_p11 = por %p119_p10, %p61_p3  ;;  %s1309_s5 = sand.u32 1, %s1190_s17  }
  0x19   : > { %s717_s6 = sshll.u32 %s1309_s5, 4  ;;  %s740_s7 = sshll.u32 %s1198_s19, 8 }
  0x1a   : > { %s1593_s30 = scalar_select %p1302_p11, 1, 0 }
  0x1b   : > { %s1594_s0 = sld [smem:[#allocation15_spill]]  ;;  %s199_s11 = scalar_lea.vmem [#allocation2], %s717_s6 }
  0x1c   : > { %s208_s12 = sshll.u32 %s199_s11, 4  ;;  %p1322_p0 = pnand %p942_p13, %p1281_p4  ;;  %s1318_s12 = int_to_ptr.vmem [resolvable:$true] %s208_s12 }
  0x1d   : > { %s196_s14 = scalar_lea.sflag [#allocation3], %s1309_s5 }
  0x1e   : > { %p998_p3 = pneg %p1322_p0 }
  0x21   : > { %s1316_s10 = scalar_lea.hbm %s1594_s0, %s740_s7  ;;  %s1001_s25 = scalar_lea.hbm %s1594_s0, 512 }
  0x22   : > { %s996_s24 = scalar_lea.hbm %s1316_s10, 256  ;;  %p1002_p4 = scmp.lt.u32.totalorder %s1316_s10, %s1594_s0 }
  0x23   : > { %p997_p2 = scmp.ne.s32.totalorder %s1316_s10, %s996_s24  ;;  %p1003_p7 = scmp.lt.u32.totalorder %s1001_s25, %s996_s24 }
  0x24   : > { %p1005_p13 = scmp.lt.u32.totalorder %s996_s24, %s1316_s10 }
  0x25   : > { %p999_p5 = pnand %p998_p3, %p997_p2  ;;  %p1004_p10 = por %p1003_p7, %p1002_p4 }
  0x27   : > { %p1000_p6 = pneg %p999_p5  ;;  %p1006_p12 = por %p1005_p13, %p1004_p10 }
  0x29   : > { %p1007_p1 = pnand %p1006_p12, %p1000_p6 }
  0x2b   : > { %1010 = shalt.err (!%p1007_p1)
}
  0x2c   : > { %s1011_s9 = scalar_lea.vmem %s1318_s12, 256  ;;  %s1204_s11 = smov [#allocation2]  }
  0x2d   : > { %p1012_p2 = scmp.ne.s32.totalorder %s1318_s12, %s1011_s9  ;;  %s1016_s26 = sshll.u32 %s1204_s11, 4  ;;  %s1017_s26 = int_to_ptr.vmem [resolvable:$false] %s1016_s26 }
  0x2e   : > { %s1018_s6 = scalar_lea.vmem %s1017_s26, 512  ;;  %p1019_p9 = scmp.lt.s32.totalorder %s1318_s12, %s1017_s26 }
  0x2f   : > { %p1014_p5 = pnand %p1012_p2, %p998_p3  ;;  %p1020_p4 = scmp.lt.s32.totalorder %s1018_s6, %s1011_s9 }
  0x31   : > { %p1015_p11 = pneg %p1014_p5  ;;  %p1021_p7 = por %p1020_p4, %p1019_p9 }
  0x33   : > { %p1022_p10 = pnand %p1021_p7, %p1015_p11 }
  0x35   : > { %1025 = shalt.err (!%p1022_p10)
}
  0x36   : > { %s1587_s24 = smov 128   ;;  %s1206_s25 = smov 8  }
  0x37   : > { %928 = dma.hbm_to_vmem [thread:$0]  (!%p1322_p0), %s1316_s10, 256, %s1318_s12, %s196_s14, %s1587_s24, %s1587_s24, %s1206_s25  }
  0x38   : > { %p237_p9 = scmp.lt.s32.totalorder %s1202_s20, 3  ;;  %s720_s7 = sshll.u32 %s1309_s5, 7 }
  0x39   : > { %s741_s8 = sshll.u32 %s1198_s19, 11  ;;  %p1596_p11 = scmp.ge.s32.totalorder %s1202_s20, 1 }
  0x3a   : > { %s1370_s6 = scalar_lea.hbm %s1581_s1, %s741_s8  ;;  %s222_s22 = scalar_lea.vmem [#allocation5], %s720_s7 }
  0x3b   : > { %p1363_p12 = pnand %p1596_p11, %p237_p9  ;;  %s229_s0 = sshll.u32 %s222_s22, 4  ;;  %s1372_s0 = int_to_ptr.vmem [resolvable:$true] %s229_s0 }
  0x3c   : > { %s219_s10 = scalar_lea.sflag [#allocation6], %s1309_s5  ;;  %s1026_s12 = scalar_lea.hbm %s1370_s6, 2048 }
  0x3d   : > { %p1027_p1 = scmp.ne.s32.totalorder %s1370_s6, %s1026_s12  ;;  %s1031_s8 = scalar_lea.hbm %s1581_s1, 4096 }
  0x3e   : > { %p1032_p2 = scmp.lt.u32.totalorder %s1370_s6, %s1581_s1  ;;  %p1033_p5 = scmp.lt.u32.totalorder %s1031_s8, %s1026_s12 }
  0x3f   : > { %p1029_p6 = pnand %p1027_p1, %p998_p3  ;;  %p1035_p7 = scmp.lt.u32.totalorder %s1026_s12, %s1370_s6 }
  0x40   : > { %p1034_p4 = por %p1033_p5, %p1032_p2 }
  0x41   : > { %p1030_p13 = pneg %p1029_p6 }
  0x42   : > { %p1036_p10 = por %p1035_p7, %p1034_p4 }
  0x44   : > { %p1037_p9 = pnand %p1036_p10, %p1030_p13 }
  0x46   : > { %1040 = shalt.err (!%p1037_p9)
}
  0x47   : > { %s1041_s22 = scalar_lea.vmem %s1372_s0, 2048  ;;  %s1207_s24 = smov [#allocation5]  }
  0x48   : > { %p1042_p11 = scmp.ne.s32.totalorder %s1372_s0, %s1041_s22  ;;  %s1046_s7 = sshll.u32 %s1207_s24, 4  ;;  %s1047_s7 = int_to_ptr.vmem [resolvable:$false] %s1046_s7 }
  0x49   : > { %s1048_s14 = scalar_lea.vmem %s1047_s7, 4096  ;;  %p1049_p8 = scmp.lt.s32.totalorder %s1372_s0, %s1047_s7 }
  0x4a   : > { %p1044_p1 = pnand %p1042_p11, %p998_p3  ;;  %p1050_p2 = scmp.lt.s32.totalorder %s1048_s14, %s1041_s22 }
  0x4c   : > { %p1045_p6 = pneg %p1044_p1  ;;  %p1051_p5 = por %p1050_p2, %p1049_p8 }
  0x4e   : > { %p1052_p4 = pnand %p1051_p5, %p1045_p6 }
  0x50   : > { %1055 = shalt.err (!%p1052_p4)
}
  0x51   : > { %s1598_s12 = smov 128   ;;  %241 = sbr.rel (%p1363_p12) target bundleno = 408 (0x198), region = 28 }
  0x52   : > { %931 = dma.hbm_to_vmem [thread:$0]  (!%p1322_p0), %s1370_s6, 2048, %s1372_s0, %s219_s10, %s1598_s12, %s1598_s12, %s1206_s25  }
  0x53   : > { %s1406_s8 = sand.u32 (!%p1363_p12), 1, %s1186_s16   ;;  %p1599_p8 = scmp.ne.s32.totalorder (!%p1363_p12), %s1591_s27, 0 }
  0x54   : > { %s1409_s11 = sshll.u32 (!%p1363_p12), %s1406_s8, 4  ;;  %s244_s13 = scalar_lea.sflag (!%p1363_p12), [#allocation3], %s1406_s8 }
  0x55   : > { %s247_s26 = scalar_lea.vmem (!%p1363_p12), [#allocation2], %s1409_s11 }
  0x58   : > { %1165 = dma.done.wait (%p1599_p8), %s244_s13, 256  }
  0x59   : > { %1167 = vsyncadd (%p1599_p8), %s244_s13, 4294967040  ;;  %s725_s0 = sshll.u32 %s1406_s8, 7  ;;  %s253_s5 = scalar_lea.sflag [#allocation6], %s1406_s8 }
  0x5a   : > { %s1419_s25 = scalar_lea.vmem [#allocation5], %s725_s0 }
  0x5b   : > { %1169 = dma.done.wait (%p1599_p8), %s253_s5, 2048  }
  0x5c   : > { %1171 = vsyncadd (%p1599_p8), %s253_s5, 4294965248  ;;  %v302_v0 = vld [vmem:[%s1419_s25] sm:$0xff]  ;;  %v303_v1 = vld [vmem:[%s1419_s25 + $0x8] sm:$0xff]  ;;  %s288_s27 = scalar_lea.vmem [#allocation8], %s1409_s11  ;;  %s479_s6 = sand.u32 1, %s1269_s21  }
  0x5d   : > { %v304_v2 = vld [vmem:[%s1419_s25 + $0x10] sm:$0xff]  ;;  %v851_v3 = vpack.c.bf16 %v303_v1, %v302_v0  ;;  %v305_v4 = vld [vmem:[%s1419_s25 + $0x18] sm:$0xff]  ;;  %v306_v6 = vld [vmem:[%s1419_s25 + $0x20] sm:$0xff]  ;;  %s518_s9 = sshll.u32 %s288_s27, 4  ;;  %s1448_s10 = sshll.u32 %s1194_s18, 8  ;;  %s1450_s9 = int_to_ptr.vmem [resolvable:$true] %s518_s9 }
  0x5e   : > { %v855_v5 = vpack.c.bf16 %v305_v4, %v304_v2  ;;  %v307_v7 = vld [vmem:[%s1419_s25 + $0x28] sm:$0xff]  ;;  %v300_v8 = vld [vmem:[%s247_s26] sm:$0xff]  ;;  %v309_v11 = vld [vmem:[%s1419_s25 + $0x38] sm:$0xff]  ;;  %s1456_s7 = scalar_lea.hbm %s1583_s3, %s1448_s10  ;;  %s1458_s14 = scalar_lea.sflag [#allocation9], %s479_s6 }
  0x5f   : > { %852 = vmatprep.subr.bf16.mxu0 %v851_v3  ;;  %884 = vmatprep.subr.bf16.mxu1 %v851_v3  ;;  %v859_v9 = vpack.c.bf16 %v307_v7, %v306_v6  ;;  %v308_v10 = vld [vmem:[%s1419_s25 + $0x30] sm:$0xff]  ;;  %v310_v13 = vld [vmem:[%s1419_s25 + $0x40] sm:$0xff]  ;;  %v311_v14 = vld [vmem:[%s1419_s25 + $0x48] sm:$0xff]  ;;  %s1056_s21 = scalar_lea.vmem %s1450_s9, 256  ;;  %p1600_p3 = scmp.ne.s32.totalorder %s1592_s28, 0 }
  0x60   : > { %854 = vmatpush3.bf16.xpose.msra.mxu0 %v851_v3  ;;  %886 = vmatpush3.bf16.msra.mxu1 %v851_v3  ;;  %v863_v12 = vpack.c.bf16 %v309_v11, %v308_v10  ;;  %v867_v15 = vpack.c.bf16 %v311_v14, %v310_v13  ;;  %v312_v16 = vld [vmem:[%s1419_s25 + $0x50] sm:$0xff]  ;;  %v313_v17 = vld [vmem:[%s1419_s25 + $0x58] sm:$0xff]  ;;  %v314_v19 = vld [vmem:[%s1419_s25 + $0x60] sm:$0xff]  ;;  %p1057_p0 = scmp.ne.s32.totalorder %s1450_s9, %s1056_s21  ;;  %s1208_s18 = smov [#allocation8]  }
  0x61   : > { %856 = vmatprep.subr.bf16.mxu0 %v855_v5  ;;  %888 = vmatprep.subr.bf16.mxu1 %v855_v5  ;;  %v871_v18 = vpack.c.bf16 %v313_v17, %v312_v16  ;;  %v315_v20 = vld [vmem:[%s1419_s25 + $0x68] sm:$0xff]  ;;  %v316_v22 = vld [vmem:[%s1419_s25 + $0x70] sm:$0xff]  ;;  %v317_v23 = vld [vmem:[%s1419_s25 + $0x78] sm:$0xff]  ;;  %s1060_s12 = sshll.u32 %s1208_s18, 4  ;;  %s1061_s12 = int_to_ptr.vmem [resolvable:$false] %s1060_s12 }
  0x62   : > { %848 = vmatprep.mubr.f32.mxu1 %v300_v8  ;;  %813 = vmatprep.mubr.f32.mxu0 %v300_v8  ;;  %v875_v21 = vpack.c.bf16 %v315_v20, %v314_v19  ;;  %v879_v24 = vpack.c.bf16 %v317_v23, %v316_v22  ;;  %v301_v25 = vld [vmem:[%s247_s26 + $0x8] sm:$0xff]  ;;  %p1058_p12 = pnand %p1057_p0, %p1600_p3  ;;  %s1062_s13 = scalar_lea.vmem %s1061_s12, 512 }
  0x63   : > { %p1063_p7 = scmp.lt.s32.totalorder %s1450_s9, %s1061_s12  ;;  %p1064_p10 = scmp.lt.s32.totalorder %s1062_s13, %s1056_s21 }
  0x64   : > { %890 = vmatpush3.bf16.msra.mxu1 %v855_v5  ;;  %p1059_p13 = pneg %p1058_p12 }
  0x65   : > { %892 = vmatprep.subr.bf16.mxu1 %v859_v9  ;;  %p1065_p9 = por %p1064_p10, %p1063_p7 }
  0x67   : > { %p1066_p11 = pnand %p1065_p9, %p1059_p13 }
  0x68   : > { %858 = vmatpush3.bf16.xpose.msra.mxu0 %v855_v5  ;;  %894 = vmatpush3.bf16.msra.mxu1 %v859_v9 }
  0x69   : > { %860 = vmatprep.subr.bf16.mxu0 %v859_v9  ;;  %896 = vmatprep.subr.bf16.mxu1 %v863_v12 }
  0x6c   : > { %898 = vmatpush3.bf16.msra.mxu1 %v863_v12 }
  0x6d   : > { %900 = vmatprep.subr.bf16.mxu1 %v867_v15 }
  0x70   : > { %862 = vmatpush3.bf16.xpose.msra.mxu0 %v859_v9  ;;  %902 = vmatpush3.bf16.msra.mxu1 %v867_v15 }
  0x71   : > { %864 = vmatprep.subr.bf16.mxu0 %v863_v12  ;;  %904 = vmatprep.subr.bf16.mxu1 %v871_v18 }
  0x74   : > { %906 = vmatpush3.bf16.msra.mxu1 %v871_v18 }
  0x75   : > { %908 = vmatprep.subr.bf16.mxu1 %v875_v21 }
  0x78   : > { %866 = vmatpush3.bf16.xpose.msra.mxu0 %v863_v12  ;;  %910 = vmatpush3.bf16.msra.mxu1 %v875_v21 }
  0x79   : > { %868 = vmatprep.subr.bf16.mxu0 %v867_v15  ;;  %912 = vmatprep.subr.bf16.mxu1 %v879_v24 }
  0x7c   : > { %914 = vmatpush3.bf16.msra.mxu1 %v879_v24 }
  0x7f   : > { %849 = vmatmul.mubr.f32.vlgmr.msra.gmra.mrb[0].mxu1 %v301_v25 }
  0x80   : > { %870 = vmatpush3.bf16.xpose.msra.mxu0 %v867_v15 }
  0x81   : > { %872 = vmatprep.subr.bf16.mxu0 %v871_v18 }
  0x88   : > { %874 = vmatpush3.bf16.xpose.msra.mxu0 %v871_v18 }
  0x89   : > { %876 = vmatprep.subr.bf16.mxu0 %v875_v21 }
  0x90   : > { %878 = vmatpush3.bf16.xpose.msra.mxu0 %v875_v21 }
  0x91   : > { %880 = vmatprep.subr.bf16.mxu0 %v879_v24 }
  0x98   : > { %882 = vmatpush3.bf16.xpose.msra.mxu0 %v879_v24 }
  0x9f   : > { %814 = vmatmul.mubr.f32.vlgmr.msra.gmra.mrb[0].mxu0 %v301_v25 }
 0x152   : > { %v850_v26 = vpop.f32.mrb[0].mxu1 }
 0x153   : > { %471 = vst [vmem:[%s288_s27 + $0x8] sm:$0xff] %v850_v26  ;;  %v459_v27 = vpop.f32.mrb[1].mxu1 }
 0x154   : > { %470 = vst [vmem:[%s288_s27] sm:$0xff] %v459_v27 }
 0x155   : > { %1069 = shalt.err (!%p1066_p11)
}
 0x156   : > { %s1070_s26 = scalar_lea.hbm %s1456_s7, 256  ;;  %s1074_s25 = scalar_lea.hbm %s1583_s3, 512 }
 0x157   : > { %p1071_p1 = scmp.ne.s32.totalorder %s1456_s7, %s1070_s26  ;;  %p1075_p5 = scmp.lt.u32.totalorder %s1456_s7, %s1583_s3 }
 0x158   : > { %p1076_p4 = scmp.lt.u32.totalorder %s1074_s25, %s1070_s26  ;;  %p1078_p0 = scmp.lt.u32.totalorder %s1070_s26, %s1456_s7 }
 0x159   : > { %p1072_p6 = pnand %p1071_p1, %p1600_p3 }
 0x15a   : > { %p1077_p8 = por %p1076_p4, %p1075_p5 }
 0x15b   : > { %p1073_p2 = pneg %p1072_p6 }
 0x15c   : > { %p1079_p12 = por %p1078_p0, %p1077_p8 }
 0x15e   : > { %p1080_p13 = pnand %p1079_p12, %p1073_p2 }
 0x160   : > { %1083 = shalt.err (!%p1080_p13)
}
 0x161   : > { %s1209_s22 = smov 128   ;;  %s1210_s24 = smov 8  }
 0x162   : > { %920 = dma.vmem_to_hbm [thread:$0]  (%p1600_p3), %s1450_s9, 256, %s1456_s7, %s1458_s14, %s1209_s22, %s1209_s22, %s1210_s24  }
 0x163   : > { %s281_s21 = scalar_lea.vmem [#allocation7], %s1409_s11  ;;  %s295_s12 = scalar_lea.vmem [#allocation10], %s1409_s11 }
 0x164   : > { %s500_s18 = sshll.u32 %s281_s21, 4  ;;  %s536_s13 = sshll.u32 %s295_s12, 4  ;;  %s1487_s18 = int_to_ptr.vmem [resolvable:$true] %s500_s18  ;;  %s1495_s13 = int_to_ptr.vmem [resolvable:$true] %s536_s13 }
 0x165   : > { %s1493_s5 = scalar_lea.hbm %s1582_s2, %s1448_s10  ;;  %s1501_s11 = scalar_lea.hbm %s1584_s4, %s1448_s10 }
 0x166   : > { %s475_s25 = scalar_lea.sflag [#allocation4], %s1406_s8  ;;  %s1084_s27 = scalar_lea.vmem %s1487_s18, 256 }
 0x167   : > { %p1085_p7 = scmp.ne.s32.totalorder %s1487_s18, %s1084_s27  ;;  %s1211_s6 = smov [#allocation7]  }
 0x168   : > { %s1088_s26 = sshll.u32 %s1211_s6, 4  ;;  %s1089_s26 = int_to_ptr.vmem [resolvable:$false] %s1088_s26 }
 0x169   : > { %p1086_p10 = pnand %p1085_p7, %p1600_p3  ;;  %s1090_s0 = scalar_lea.vmem %s1089_s26, 512 }
 0x16a   : > { %p1091_p11 = scmp.lt.s32.totalorder %s1487_s18, %s1089_s26  ;;  %p1092_p1 = scmp.lt.s32.totalorder %s1090_s0, %s1084_s27 }
 0x16b   : > { %p1087_p9 = pneg %p1086_p10 }
 0x16c   : > { %p1093_p6 = por %p1092_p1, %p1091_p11 }
 0x16e   : > { %p1094_p2 = pnand %p1093_p6, %p1087_p9 }
 0x172   : > { %v815_v28 = vpop.f32.mrb[0].mxu0 }
 0x173   : > { %469 = vst [vmem:[%s281_s21 + $0x8] sm:$0xff] %v815_v28  ;;  %473 = vst [vmem:[%s295_s12 + $0x8] sm:$0xff] %v815_v28  ;;  %v384_v29 = vpop.f32.mrb[1].mxu0 }
 0x174   : > { %468 = vst [vmem:[%s281_s21] sm:$0xff] %v384_v29  ;;  %472 = vst [vmem:[%s295_s12] sm:$0xff] %v384_v29 }
 0x175   : > { %1097 = shalt.err (!%p1094_p2)
}
 0x176   : > { %s1098_s10 = scalar_lea.hbm %s1493_s5, 256  ;;  %s1102_s9 = scalar_lea.hbm %s1582_s2, 512 }
 0x177   : > { %p1099_p5 = scmp.ne.s32.totalorder %s1493_s5, %s1098_s10  ;;  %p1103_p0 = scmp.lt.u32.totalorder %s1493_s5, %s1582_s2 }
 0x178   : > { %p1104_p12 = scmp.lt.u32.totalorder %s1102_s9, %s1098_s10  ;;  %p1106_p7 = scmp.lt.u32.totalorder %s1098_s10, %s1493_s5 }
 0x179   : > { %p1100_p4 = pnand %p1099_p5, %p1600_p3 }
 0x17a   : > { %p1105_p13 = por %p1104_p12, %p1103_p0 }
 0x17b   : > { %p1101_p8 = pneg %p1100_p4 }
 0x17c   : > { %p1107_p10 = por %p1106_p7, %p1105_p13 }
 0x17e   : > { %p1108_p9 = pnand %p1107_p10, %p1101_p8 }
 0x180   : > { %1111 = shalt.err (!%p1108_p9)
}
 0x181   : > { %919 = dma.vmem_to_hbm [thread:$0]  (%p1600_p3), %s1487_s18, 256, %s1493_s5, %s475_s25, %s1209_s22, %s1209_s22, %s1210_s24  }
 0x182   : > { %s1112_s27 = scalar_lea.vmem %s1495_s13, 256  ;;  %s1212_s26 = smov [#allocation10]  }
 0x183   : > { %p1113_p11 = scmp.ne.s32.totalorder %s1495_s13, %s1112_s27  ;;  %s1116_s0 = sshll.u32 %s1212_s26, 4  ;;  %s1117_s0 = int_to_ptr.vmem [resolvable:$false] %s1116_s0 }
 0x184   : > { %s1118_s10 = scalar_lea.vmem %s1117_s0, 512  ;;  %p1119_p2 = scmp.lt.s32.totalorder %s1495_s13, %s1117_s0 }
 0x185   : > { %p1114_p1 = pnand %p1113_p11, %p1600_p3  ;;  %p1120_p5 = scmp.lt.s32.totalorder %s1118_s10, %s1112_s27 }
 0x187   : > { %p1115_p6 = pneg %p1114_p1  ;;  %p1121_p4 = por %p1120_p5, %p1119_p2 }
 0x189   : > { %p1122_p8 = pnand %p1121_p4, %p1115_p6 }
 0x18b   : > { %1125 = shalt.err (!%p1122_p8)
}
 0x18c   : > { %s1126_s8 = scalar_lea.hbm %s1501_s11, 256  ;;  %s1130_s25 = scalar_lea.hbm %s1584_s4, 512 }
 0x18d   : > { %p1127_p0 = scmp.ne.s32.totalorder %s1501_s11, %s1126_s8  ;;  %p1131_p7 = scmp.lt.u32.totalorder %s1501_s11, %s1584_s4 }
 0x18e   : > { %p1132_p10 = scmp.lt.u32.totalorder %s1130_s25, %s1126_s8  ;;  %p1134_p11 = scmp.lt.u32.totalorder %s1126_s8, %s1501_s11 }
 0x18f   : > { %p1128_p12 = pnand %p1127_p0, %p1600_p3 }
 0x190   : > { %p1133_p9 = por %p1132_p10, %p1131_p7 }
 0x191   : > { %p1129_p13 = pneg %p1128_p12 }
 0x192   : > { %p1135_p1 = por %p1134_p11, %p1133_p9 }
 0x194   : > { %p1136_p6 = pnand %p1135_p1, %p1129_p13 }
 0x196   : > { %1139 = shalt.err (!%p1136_p6)
}
 0x197   : > { %921 = dma.vmem_to_hbm [thread:$0]  (%p1600_p3), %s1495_s13, 256, %s1501_s11, %s1458_s14, %s1209_s22, %s1209_s22, %s1210_s24  }
 0x198 PF: > { %s551_s9 = sand.u32 1, %s1182_s15   ;;  %p1601_p2 = scmp.ne.s32.totalorder %s1593_s30, 0 }
 0x199   : > { %p1602_p5 = scmp.ge.s32.totalorder %s1202_s20, 2  ;;  %s552_s7 = scalar_lea.sflag [#allocation4], %s551_s9 }
 0x19b   : > { %p933_p4 = pnand %p1602_p5, %p1601_p2 }
 0x19d   : > { %1173 = dma.done.wait (!%p933_p4), %s552_s7, 256  }
 0x19e   : > { %1175 = vsyncadd (!%p933_p4), %s552_s7, 4294967040  ;;  %s1603_s28 = sadd.s32 4294967294, %s1202_s20  }
 0x19f   : > { %s560_s6 = sand.u32 1, %s1603_s28  }
 0x1a0   : > { %s561_s27 = scalar_lea.sflag [#allocation9], %s560_s6 }
 0x1a1   : > { %1177 = dma.done.wait (!%p933_p4), %s561_s27, 512  }
 0x1a2   : > { %1179 = vsyncadd (!%p933_p4), %s561_s27, 4294966784  ;;  %s27_s20 = sadd.s32 1, %s1202_s20   ;;  %s1604_s15 = smov %s1186_s16 }
 0x1a3   : > { %p24_p3 = scmp.ge.s32.totalorder %s27_s20, 4   ;;  %s1605_s16 = smov %s1190_s17 }
 0x1a4   : > { %s1606_s17 = smov %s1300_s29  ;;  %s1607_s18 = smov %s1198_s19 }
 0x1a5   : > { %s1608_s19 = smov %s1610_s23  ;;  %26 = sbr.rel (!%p24_p3) target bundleno = 12 (0xc), region = 118 }
 0x1ac   :  { %575 = vsyncpa [#allocation3], 1 }
 0x1ad   :  { %577 = vsyncpa [#allocation3 + $0x1], 1 }
 0x1ae   :  { %578 = vsyncpa [#allocation6], 1 }
 0x1af   :  { %580 = vsyncpa [#allocation6 + $0x1], 1 }
 0x1b0   :  { %581 = vsyncpa [#allocation4], 1 }
 0x1b1   :  { %583 = vsyncpa [#allocation4 + $0x1], 1 }
 0x1b2   :  { %584 = vsyncpa [#allocation9], 1 }
 0x1b3   :  { %586 = vsyncpa [#allocation9 + $0x1], 1 }

</bundles_post_ra>
